<compile_context>
chip_gen: v5e
topology: v5e:2x2
jax: 0.10.0
libtpu: 0.0.40
codegen_flags: <defaults>
</compile_context>

<pallas_src>
import jax
import jax.numpy as jnp
from jax.experimental import pallas as pl
from jax.experimental.pallas import tpu as pltpu


def rnn_kernel(x_ref, wih_ref, whh_ref, wfc_ref, bfc_ref, out_ref):
    SBp, _ = x_ref.shape
    Bp = out_ref.shape[0]
    S = SBp // Bp

    # --- input projection: one MXU matmul for all timesteps, bias already
    # folded in via the augmented "1" column of x / bias row of W_ih^T.
    xw = jnp.dot(x_ref[...], wih_ref[...],
                 preferred_element_type=jnp.float32)          # (S*Bp, Hp) value

    whh = whh_ref[...]                                        # (Hp, Hp), resident

    # --- serial recurrence, fully unrolled (static slices of the xw value).
    # Per step only h @ W_hh^T + tanh on the critical path. Step 0 skips the
    # matmul since h0 == 0.
    h = jnp.tanh(xw[0:Bp, :])
    for t in range(1, S):
        h = jnp.tanh(xw[t * Bp:(t + 1) * Bp, :]
                     + jnp.dot(h, whh, preferred_element_type=jnp.float32))

    # --- final projection, lane-dense (Bp, 128) output.
    out_ref[...] = (jnp.dot(h, wfc_ref[...],
                            preferred_element_type=jnp.float32)
                    + bfc_ref[...])


def rnn_forward(x, w_ih, w_hh, b_ih, b_hh, w_fc, b_fc):
    """x: (batch, seq, input_size) float32.  Returns (batch, 1) float32."""
    B, S, I = x.shape
    H = w_ih.shape[0]

    LANE = 128
    SUB = 8
    Bp = ((B + SUB - 1) // SUB) * SUB
    Ip = ((I + 1 + LANE - 1) // LANE) * LANE        # +1 slot for the bias column
    Hp = ((H + LANE - 1) // LANE) * LANE

    # Glue (tiny arrays; padding dominates at these toy shapes):
    # time-major padded x flattened to (S*Bp, Ip) so the per-step slice is a
    # contiguous sublane block and the input projection is one matmul.
    # Column I is 1.0 for real batch rows only -> bias applied to real rows,
    # padded rows stay exactly zero through the recurrence.
    x_tm = jnp.transpose(x, (1, 0, 2)).astype(jnp.float32)             # (S, B, I)
    x_pad = (jnp.zeros((S, Bp, Ip), jnp.float32)
             .at[:, :B, :I].set(x_tm)
             .at[:, :B, I].set(1.0))
    x_pad = x_pad.reshape(S * Bp, Ip)

    wih_pad = (jnp.zeros((Ip, Hp), jnp.float32)
               .at[:I, :H].set(w_ih.T)
               .at[I, :H].set(b_ih + b_hh))        # folded (b_ih + b_hh) row
    whh_pad = jnp.zeros((Hp, Hp), jnp.float32).at[:H, :H].set(w_hh.T)
    wfc_pad = jnp.zeros((Hp, LANE), jnp.float32).at[:H, 0].set(w_fc[0])
    bfc_pad = jnp.zeros((1, LANE), jnp.float32).at[0, 0].set(b_fc[0])

    out_pad = pl.pallas_call(
        rnn_kernel,
        out_shape=jax.ShapeDtypeStruct((Bp, LANE), jnp.float32),
        grid_spec=pltpu.PrefetchScalarGridSpec(
            num_scalar_prefetch=0,
            grid=(1,),
            in_specs=[
                pl.BlockSpec((S * Bp, Ip), lambda i: (0, 0)),   # x (time-major, +bias col)
                pl.BlockSpec((Ip, Hp), lambda i: (0, 0)),       # W_ih^T (+bias row)
                pl.BlockSpec((Hp, Hp), lambda i: (0, 0)),       # W_hh^T (padded)
                pl.BlockSpec((Hp, LANE), lambda i: (0, 0)),     # W_fc^T (padded)
                pl.BlockSpec((1, LANE), lambda i: (0, 0)),      # b_fc (padded)
            ],
            out_specs=pl.BlockSpec((Bp, LANE), lambda i: (0, 0)),
        ),
        compiler_params=pltpu.CompilerParams(
            dimension_semantics=("arbitrary",)),
    )(x_pad, wih_pad, whh_pad, wfc_pad, bfc_pad)

    return out_pad[:B, :1]


def reference_forward(x, w_ih, w_hh, b_ih, b_hh, w_fc, b_fc):
    """Pure-JAX reference of the same forward pass (for sanity check)."""
    B, S, I = x.shape
    H = w_ih.shape[0]
    h = jnp.zeros((B, H), jnp.float32)
    for t in range(S):
        h = jnp.tanh(x[:, t, :] @ w_ih.T + b_ih + h @ w_hh.T + b_hh)
    return h @ w_fc.T + b_fc


if __name__ == "__main__":
    # Small shapes consistent with the module: batch=2, seq=8, input_size=16,
    # hidden_size=12 (module default), output=1.
    B, S, I, H = 2, 8, 16, 12

    key = jax.random.PRNGKey(0)
    kx, k1, k2, k3, k4, k5, k6 = jax.random.split(key, 7)

    x = jax.random.normal(kx, (B, S, I), dtype=jnp.float32)

    # Deterministic parameter init (PyTorch-style uniform(-1/sqrt(H), 1/sqrt(H))).
    bound = 1.0 / jnp.sqrt(jnp.float32(H))
    w_ih = jax.random.uniform(k1, (H, I), jnp.float32, -bound, bound)
    w_hh = jax.random.uniform(k2, (H, H), jnp.float32, -bound, bound)
    b_ih = jax.random.uniform(k3, (H,), jnp.float32, -bound, bound)
    b_hh = jax.random.uniform(k4, (H,), jnp.float32, -bound, bound)
    w_fc = jax.random.uniform(k5, (1, H), jnp.float32, -bound, bound)
    b_fc = jax.random.uniform(k6, (1,), jnp.float32, -bound, bound)

    out = rnn_forward(x, w_ih, w_hh, b_ih, b_hh, w_fc, b_fc)
    out = jax.block_until_ready(out)

    ref = reference_forward(x, w_ih, w_hh, b_ih, b_hh, w_fc, b_fc)
    assert out.shape == (B, 1), out.shape
    assert jnp.allclose(out, ref, atol=1e-5, rtol=1e-5), (out, ref)

    print("KERNEL_OK")
</pallas_src>

<mosaic_0001>
module attributes {stable_mosaic.version = 11 : i64} {
  func.func @rnn_kernel(%arg0: i32, %arg1: memref<64x128xf32, #tpu.memory_space<vmem>>, %arg2: memref<128x128xf32, #tpu.memory_space<vmem>>, %arg3: memref<128x128xf32, #tpu.memory_space<vmem>>, %arg4: memref<128x128xf32, #tpu.memory_space<vmem>>, %arg5: memref<1x128xf32, #tpu.memory_space<vmem>>, %arg6: memref<8x128xf32, #tpu.memory_space<vmem>>) attributes {dimension_semantics = [#tpu.dimension_semantics<arbitrary>], iteration_bounds = array<i64: 1>, scalar_prefetch = 0 : i64, scratch_operands = 0 : i64, tpu.core_type = #tpu.core_type<tc>, window_params = [{pipeline_mode = #tpu.pipeline_mode<synchronous>, transform_indices = @transform_0, window_bounds = array<i64: 64, 128>}, {pipeline_mode = #tpu.pipeline_mode<synchronous>, transform_indices = @transform_1, window_bounds = array<i64: 128, 128>}, {pipeline_mode = #tpu.pipeline_mode<synchronous>, transform_indices = @transform_2, window_bounds = array<i64: 128, 128>}, {pipeline_mode = #tpu.pipeline_mode<synchronous>, transform_indices = @transform_3, window_bounds = array<i64: 128, 128>}, {pipeline_mode = #tpu.pipeline_mode<synchronous>, transform_indices = @transform_4, window_bounds = array<i64: 1, 128>}, {pipeline_mode = #tpu.pipeline_mode<synchronous>, transform_indices = @transform_5, window_bounds = array<i64: 8, 128>}]} {
    %c0 = arith.constant 0 : index
    %c0_0 = arith.constant 0 : index
    %0 = vector.load %arg1[%c0, %c0_0] : memref<64x128xf32, #tpu.memory_space<vmem>>, vector<64x128xf32>
    %c0_1 = arith.constant 0 : index
    %c0_2 = arith.constant 0 : index
    %1 = vector.load %arg2[%c0_1, %c0_2] : memref<128x128xf32, #tpu.memory_space<vmem>>, vector<128x128xf32>
    %cst = arith.constant dense<0.000000e+00> : vector<64x128xf32>
    %2 = tpu.matmul %0, %1, %cst {dimension_numbers = #tpu.dot_dimension_numbers<[1], [0], [0], [1], [0, 0, 1, 1], [], []>} : vector<64x128xf32>, vector<128x128xf32>, vector<64x128xf32> -> vector<64x128xf32>
    %c0_3 = arith.constant 0 : index
    %c0_4 = arith.constant 0 : index
    %3 = vector.load %arg3[%c0_3, %c0_4] : memref<128x128xf32, #tpu.memory_space<vmem>>, vector<128x128xf32>
    %4 = vector.extract_strided_slice %2 {offsets = [0, 0], sizes = [8, 128], strides = [1, 1]} : vector<64x128xf32> to vector<8x128xf32>
    %5 = math.tanh %4 : vector<8x128xf32>
    %6 = vector.extract_strided_slice %2 {offsets = [8, 0], sizes = [8, 128], strides = [1, 1]} : vector<64x128xf32> to vector<8x128xf32>
    %cst_5 = arith.constant dense<0.000000e+00> : vector<8x128xf32>
    %7 = tpu.matmul %5, %3, %cst_5 {dimension_numbers = #tpu.dot_dimension_numbers<[1], [0], [0], [1], [0, 0, 1, 1], [], []>} : vector<8x128xf32>, vector<128x128xf32>, vector<8x128xf32> -> vector<8x128xf32>
    %8 = arith.addf %6, %7 : vector<8x128xf32>
    %9 = math.tanh %8 : vector<8x128xf32>
    %10 = vector.extract_strided_slice %2 {offsets = [16, 0], sizes = [8, 128], strides = [1, 1]} : vector<64x128xf32> to vector<8x128xf32>
    %cst_6 = arith.constant dense<0.000000e+00> : vector<8x128xf32>
    %11 = tpu.matmul %9, %3, %cst_6 {dimension_numbers = #tpu.dot_dimension_numbers<[1], [0], [0], [1], [0, 0, 1, 1], [], []>} : vector<8x128xf32>, vector<128x128xf32>, vector<8x128xf32> -> vector<8x128xf32>
    %12 = arith.addf %10, %11 : vector<8x128xf32>
    %13 = math.tanh %12 : vector<8x128xf32>
    %14 = vector.extract_strided_slice %2 {offsets = [24, 0], sizes = [8, 128], strides = [1, 1]} : vector<64x128xf32> to vector<8x128xf32>
    %cst_7 = arith.constant dense<0.000000e+00> : vector<8x128xf32>
    %15 = tpu.matmul %13, %3, %cst_7 {dimension_numbers = #tpu.dot_dimension_numbers<[1], [0], [0], [1], [0, 0, 1, 1], [], []>} : vector<8x128xf32>, vector<128x128xf32>, vector<8x128xf32> -> vector<8x128xf32>
    %16 = arith.addf %14, %15 : vector<8x128xf32>
    %17 = math.tanh %16 : vector<8x128xf32>
    %18 = vector.extract_strided_slice %2 {offsets = [32, 0], sizes = [8, 128], strides = [1, 1]} : vector<64x128xf32> to vector<8x128xf32>
    %cst_8 = arith.constant dense<0.000000e+00> : vector<8x128xf32>
    %19 = tpu.matmul %17, %3, %cst_8 {dimension_numbers = #tpu.dot_dimension_numbers<[1], [0], [0], [1], [0, 0, 1, 1], [], []>} : vector<8x128xf32>, vector<128x128xf32>, vector<8x128xf32> -> vector<8x128xf32>
    %20 = arith.addf %18, %19 : vector<8x128xf32>
    %21 = math.tanh %20 : vector<8x128xf32>
    %22 = vector.extract_strided_slice %2 {offsets = [40, 0], sizes = [8, 128], strides = [1, 1]} : vector<64x128xf32> to vector<8x128xf32>
    %cst_9 = arith.constant dense<0.000000e+00> : vector<8x128xf32>
    %23 = tpu.matmul %21, %3, %cst_9 {dimension_numbers = #tpu.dot_dimension_numbers<[1], [0], [0], [1], [0, 0, 1, 1], [], []>} : vector<8x128xf32>, vector<128x128xf32>, vector<8x128xf32> -> vector<8x128xf32>
    %24 = arith.addf %22, %23 : vector<8x128xf32>
    %25 = math.tanh %24 : vector<8x128xf32>
    %26 = vector.extract_strided_slice %2 {offsets = [48, 0], sizes = [8, 128], strides = [1, 1]} : vector<64x128xf32> to vector<8x128xf32>
    %cst_10 = arith.constant dense<0.000000e+00> : vector<8x128xf32>
    %27 = tpu.matmul %25, %3, %cst_10 {dimension_numbers = #tpu.dot_dimension_numbers<[1], [0], [0], [1], [0, 0, 1, 1], [], []>} : vector<8x128xf32>, vector<128x128xf32>, vector<8x128xf32> -> vector<8x128xf32>
    %28 = arith.addf %26, %27 : vector<8x128xf32>
    %29 = math.tanh %28 : vector<8x128xf32>
    %30 = vector.extract_strided_slice %2 {offsets = [56, 0], sizes = [8, 128], strides = [1, 1]} : vector<64x128xf32> to vector<8x128xf32>
    %cst_11 = arith.constant dense<0.000000e+00> : vector<8x128xf32>
    %31 = tpu.matmul %29, %3, %cst_11 {dimension_numbers = #tpu.dot_dimension_numbers<[1], [0], [0], [1], [0, 0, 1, 1], [], []>} : vector<8x128xf32>, vector<128x128xf32>, vector<8x128xf32> -> vector<8x128xf32>
    %32 = arith.addf %30, %31 : vector<8x128xf32>
    %33 = math.tanh %32 : vector<8x128xf32>
    %c0_12 = arith.constant 0 : index
    %c0_13 = arith.constant 0 : index
    %34 = vector.load %arg4[%c0_12, %c0_13] : memref<128x128xf32, #tpu.memory_space<vmem>>, vector<128x128xf32>
    %cst_14 = arith.constant dense<0.000000e+00> : vector<8x128xf32>
    %35 = tpu.matmul %33, %34, %cst_14 {dimension_numbers = #tpu.dot_dimension_numbers<[1], [0], [0], [1], [0, 0, 1, 1], [], []>} : vector<8x128xf32>, vector<128x128xf32>, vector<8x128xf32> -> vector<8x128xf32>
    %c0_15 = arith.constant 0 : index
    %c0_16 = arith.constant 0 : index
    %36 = vector.load %arg5[%c0_15, %c0_16] : memref<1x128xf32, #tpu.memory_space<vmem>>, vector<1x128xf32>
    %37 = vector.broadcast %36 : vector<1x128xf32> to vector<8x128xf32>
    %38 = arith.addf %35, %37 : vector<8x128xf32>
    %c0_17 = arith.constant 0 : index
    %c0_18 = arith.constant 0 : index
    %39 = vector.load %arg6[%c0_17, %c0_18] : memref<8x128xf32, #tpu.memory_space<vmem>>, vector<8x128xf32>
    tpu.vector_store %arg6[%c0_17, %c0_18], %38 {strides = array<i32>} : memref<8x128xf32, #tpu.memory_space<vmem>>, vector<8x128xf32>,
    return
  }
  func.func @transform_0(%arg0: i32) -> (i32, i32) {
    %c0_i32 = arith.constant 0 : i32
    %c0_i32_0 = arith.constant 0 : i32
    %c0_i32_1 = arith.constant 0 : i32
    return %c0_i32, %c0_i32_0 : i32, i32
  }
  func.func @transform_1(%arg0: i32) -> (i32, i32) {
    %c0_i32 = arith.constant 0 : i32
    %c0_i32_0 = arith.constant 0 : i32
    %c0_i32_1 = arith.constant 0 : i32
    return %c0_i32, %c0_i32_0 : i32, i32
  }
  func.func @transform_2(%arg0: i32) -> (i32, i32) {
    %c0_i32 = arith.constant 0 : i32
    %c0_i32_0 = arith.constant 0 : i32
    %c0_i32_1 = arith.constant 0 : i32
    return %c0_i32, %c0_i32_0 : i32, i32
  }
  func.func @transform_3(%arg0: i32) -> (i32, i32) {
    %c0_i32 = arith.constant 0 : i32
    %c0_i32_0 = arith.constant 0 : i32
    %c0_i32_1 = arith.constant 0 : i32
    return %c0_i32, %c0_i32_0 : i32, i32
  }
  func.func @transform_4(%arg0: i32) -> (i32, i32) {
    %c0_i32 = arith.constant 0 : i32
    %c0_i32_0 = arith.constant 0 : i32
    %c0_i32_1 = arith.constant 0 : i32
    return %c0_i32, %c0_i32_0 : i32, i32
  }
  func.func @transform_5(%arg0: i32) -> (i32, i32) {
    %c0_i32 = arith.constant 0 : i32
    %c0_i32_0 = arith.constant 0 : i32
    %c0_i32_1 = arith.constant 0 : i32
    return %c0_i32, %c0_i32_0 : i32, i32
  }
}

</mosaic_0001>

<bundles_post_ra>
// kernel: tpu_custom_call.1
= control target key start
LH: loop header
LB: loop body
LE: loop exit
PB: predicated region body
PF: predicated region fallthrough
CT: control target
= control target key end

     0   :  { %10 = vsyncpa [#allocation3], 0  ;;  %s704_s0 = inlined_call_operand.hbm [shape: f32[64,128], index: 0, kind: input, shape index: {}]   ;;  %s705_s1 = inlined_call_operand.hbm [shape: f32[128,128], index: 1, kind: input, shape index: {}]   ;;  %s706_s2 = inlined_call_operand.hbm [shape: f32[128,128], index: 2, kind: input, shape index: {}]   ;;  %s707_s3 = inlined_call_operand.hbm [shape: f32[128,128], index: 3, kind: input, shape index: {}]   ;;  %s708_s4 = inlined_call_operand.vmem [shape: f32[1,128], index: 4, kind: input, shape index: {}]   ;;  %s709_s5 = inlined_call_operand.hbm [shape: f32[8,128], index: 5, kind: output, shape index: {}]  }
   0x1   :  { %11 = vsyncpa [#allocation6], 0 }
   0x2   :  { %12 = vsyncpa [#allocation9], 0 }
   0x3   :  { %13 = vsyncpa [#allocation4], 0  ;;  %s31_s20 = sshll.u32 %s705_s1, 4  ;;  %s532_s21 = smov [#allocation5]   ;;  %s32_s20 = int_to_ptr.hbm [resolvable:$true] %s31_s20 }
   0x4   :  { %s33_s22 = sshll.u32 %s532_s21, 4  ;;  %s18_s25 = sshll.u32 %s704_s0, 4  ;;  %s34_s22 = int_to_ptr.vmem [resolvable:$true] %s33_s22  ;;  %s19_s25 = int_to_ptr.hbm [resolvable:$true] %s18_s25 }
   0x5   :  { %s533_s26 = smov 128   ;;  %s534_s27 = smov 8  }
   0x6   :  { %39 = dma.hbm_to_vmem [thread:$0]  %s32_s20, 2048, %s34_s22, [#allocation6], %s533_s26, %s533_s26, %s534_s27  }
   0x7   :  { %s535_s28 = smov [#allocation2]   ;;  %s44_s7 = sshll.u32 %s706_s2, 4  ;;  %s45_s7 = int_to_ptr.hbm [resolvable:$true] %s44_s7 }
   0x8   :  { %s20_s29 = sshll.u32 %s535_s28, 4  ;;  %s57_s9 = sshll.u32 %s707_s3, 4  ;;  %s21_s29 = int_to_ptr.vmem [resolvable:$true] %s20_s29  ;;  %s58_s9 = int_to_ptr.hbm [resolvable:$true] %s57_s9 }
   0x9   :  { %26 = dma.hbm_to_vmem [thread:$0]  %s19_s25, 1024, %s21_s29, [#allocation3], %s533_s26, %s533_s26, %s534_s27  }
   0xa   :  { %s536_s10 = smov [#allocation7]   ;;  %s537_s0 = smov [#allocation8]  }
   0xb   :  { %s46_s11 = sshll.u32 %s536_s10, 4  ;;  %s59_s12 = sshll.u32 %s537_s0, 4  ;;  %s47_s11 = int_to_ptr.vmem [resolvable:$true] %s46_s11  ;;  %s60_s12 = int_to_ptr.vmem [resolvable:$true] %s59_s12 }
   0xc   :  { %52 = dma.hbm_to_vmem [thread:$0]  %s45_s7, 2048, %s47_s11, [#allocation6], %s533_s26, %s533_s26, %s534_s27  }
   0xd   :  { %65 = dma.hbm_to_vmem [thread:$0]  %s58_s9, 2048, %s60_s12, [#allocation9], %s533_s26, %s533_s26, %s534_s27  }
   0xe   :  { %524 = dma.done.wait [#allocation3], 1024  }
   0xf   :  { %525 = vsyncadd [#allocation3], 4294966272 }
  0x10   :  { %526 = dma.done.wait [#allocation6], 4096  }
  0x11   :  { %527 = vsyncadd [#allocation6], 4294963200 }
  0x12   :  { %528 = dma.done.wait [#allocation9], 2048  }
  0x13   :  { %529 = vsyncadd [#allocation9], 4294965248  ;;  %v107_v0 = vld [vmem:[#allocation5 + $0x78] sm:$0xff]  ;;  %v106_v1 = vld [vmem:[#allocation5 + $0x70] sm:$0xff]  ;;  %s538_s13 = smov [#allocation10]   ;;  %s368_s17 = sshll.u32 %s709_s5, 4  ;;  %s369_s17 = int_to_ptr.hbm [resolvable:$true] %s368_s17 }
  0x14   :  { %108 = vmatpush.msra.mxu0 %v107_v0  ;;  %v105_v2 = vld [vmem:[#allocation5 + $0x68] sm:$0xff]  ;;  %v104_v3 = vld [vmem:[#allocation5 + $0x60] sm:$0xff]  ;;  %v581_v4 = vld [vmem:[#allocation7 + $0x78] sm:$0xff]  ;;  %s366_s14 = sshll.u32 %s538_s13, 4  ;;  %s367_s14 = int_to_ptr.vmem [resolvable:$true] %s366_s14 }
  0x15   :  { %v103_v5 = vld [vmem:[#allocation5 + $0x58] sm:$0xff]  ;;  %166 = vmatpush.msra.mxu1 %v581_v4  ;;  %v584_v6 = vld [vmem:[#allocation7 + $0x70] sm:$0xff]  ;;  %188 = vmatpush.msra.mxu2 %v581_v4  ;;  %v587_v7 = vld [vmem:[#allocation7 + $0x68] sm:$0xff] }
  0x16   :  { %109 = vmatpush.msra.mxu0 %v106_v1  ;;  %210 = vmatpush.msra.mxu3 %v581_v4  ;;  %v102_v8 = vld [vmem:[#allocation5 + $0x50] sm:$0xff]  ;;  %v592_v9 = vld [vmem:[#allocation7 + $0x60] sm:$0xff]  ;;  %v101_v10 = vld [vmem:[#allocation5 + $0x48] sm:$0xff] }
  0x17   :  { %167 = vmatpush.msra.mxu1 %v584_v6  ;;  %189 = vmatpush.msra.mxu2 %v584_v6  ;;  %v597_v11 = vld [vmem:[#allocation7 + $0x58] sm:$0xff]  ;;  %v100_v12 = vld [vmem:[#allocation5 + $0x40] sm:$0xff]  ;;  %v602_v13 = vld [vmem:[#allocation7 + $0x50] sm:$0xff] }
  0x18   :  { %110 = vmatpush.msra.mxu0 %v105_v2  ;;  %211 = vmatpush.msra.mxu3 %v584_v6  ;;  %v99_v14 = vld [vmem:[#allocation5 + $0x38] sm:$0xff]  ;;  %v607_v15 = vld [vmem:[#allocation7 + $0x48] sm:$0xff]  ;;  %v98_v16 = vld [vmem:[#allocation5 + $0x30] sm:$0xff] }
  0x19   :  { %168 = vmatpush.msra.mxu1 %v587_v7  ;;  %190 = vmatpush.msra.mxu2 %v587_v7  ;;  %v612_v17 = vld [vmem:[#allocation7 + $0x40] sm:$0xff]  ;;  %v97_v18 = vld [vmem:[#allocation5 + $0x28] sm:$0xff]  ;;  %v617_v19 = vld [vmem:[#allocation7 + $0x38] sm:$0xff] }
  0x1a   :  { %111 = vmatpush.msra.mxu0 %v104_v3  ;;  %212 = vmatpush.msra.mxu3 %v587_v7  ;;  %v96_v20 = vld [vmem:[#allocation5 + $0x20] sm:$0xff]  ;;  %v622_v21 = vld [vmem:[#allocation7 + $0x30] sm:$0xff]  ;;  %v95_v22 = vld [vmem:[#allocation5 + $0x18] sm:$0xff] }
  0x1b   :  { %169 = vmatpush.msra.mxu1 %v592_v9  ;;  %191 = vmatpush.msra.mxu2 %v592_v9  ;;  %v627_v23 = vld [vmem:[#allocation7 + $0x28] sm:$0xff]  ;;  %v94_v24 = vld [vmem:[#allocation5 + $0x10] sm:$0xff]  ;;  %v632_v25 = vld [vmem:[#allocation7 + $0x20] sm:$0xff] }
  0x1c   :  { %112 = vmatpush.msra.mxu0 %v103_v5  ;;  %213 = vmatpush.msra.mxu3 %v592_v9  ;;  %v93_v26 = vld [vmem:[#allocation5 + $0x8] sm:$0xff]  ;;  %v92_v27 = vld [vmem:[#allocation5] sm:$0xff]  ;;  %v152_v29 = vld [vmem:[#allocation7 + $0x18] sm:$0xff] }
  0x1d   :  { %170 = vmatpush.msra.mxu1 %v597_v11  ;;  %192 = vmatpush.msra.mxu2 %v597_v11  ;;  %v84_v28 = vld [vmem:[#allocation2] sm:$0xff]  ;;  %v151_v30 = vld [vmem:[#allocation7 + $0x10] sm:$0xff]  ;;  %v653_v31 = vld [vmem:[#allocation7 + $0x8] sm:$0xff] }
  0x1e   :  { %113 = vmatpush.msra.mxu0 %v102_v8  ;;  %214 = vmatpush.msra.mxu3 %v597_v11  ;;  %v85_v32 = vld [vmem:[#allocation2 + $0x8] sm:$0xff]  ;;  %v149_v33 = vld [vmem:[#allocation7] sm:$0xff]  ;;  %v86_v36 = vld [vmem:[#allocation2 + $0x10] sm:$0xff] }
  0x1f   :  { %171 = vmatpush.msra.mxu1 %v602_v13  ;;  %193 = vmatpush.msra.mxu2 %v602_v13  ;;  %v87_v41 = vld [vmem:[#allocation2 + $0x18] sm:$0xff]  ;;  %v88_v46 = vld [vmem:[#allocation2 + $0x20] sm:$0xff]  ;;  %v89_v51 = vld [vmem:[#allocation2 + $0x28] sm:$0xff] }
  0x20   :  { %114 = vmatpush.msra.mxu0 %v101_v10  ;;  %215 = vmatpush.msra.mxu3 %v602_v13  ;;  %v90_v56 = vld [vmem:[#allocation2 + $0x30] sm:$0xff]  ;;  %v91_v61 = vld [vmem:[#allocation2 + $0x38] sm:$0xff]  ;;  %v333_v0 = vld [vmem:[#allocation8 + $0x68] sm:$0xff] }
  0x21   :  { %172 = vmatpush.msra.mxu1 %v607_v15  ;;  %194 = vmatpush.msra.mxu2 %v607_v15  ;;  %v335_v62 = vld [vmem:[#allocation8 + $0x78] sm:$0xff]  ;;  %v334_v63 = vld [vmem:[#allocation8 + $0x70] sm:$0xff]  ;;  %v332_v1 = vld [vmem:[#allocation8 + $0x60] sm:$0xff] }
  0x22   :  { %115 = vmatpush.msra.mxu0 %v100_v12  ;;  %216 = vmatpush.msra.mxu3 %v607_v15  ;;  %v331_v2 = vld [vmem:[#allocation8 + $0x58] sm:$0xff]  ;;  %v330_v3 = vld [vmem:[#allocation8 + $0x50] sm:$0xff]  ;;  %v325_v12 = vld [vmem:[#allocation8 + $0x28] sm:$0xff] }
  0x23   :  { %173 = vmatpush.msra.mxu1 %v612_v17  ;;  %195 = vmatpush.msra.mxu2 %v612_v17  ;;  %v327_v10 = vld [vmem:[#allocation8 + $0x38] sm:$0xff] }
  0x24   :  { %116 = vmatpush.msra.mxu0 %v99_v14  ;;  %217 = vmatpush.msra.mxu3 %v612_v17  ;;  %v323_v14 = vld [vmem:[#allocation8 + $0x18] sm:$0xff] }
  0x25   :  { %174 = vmatpush.msra.mxu1 %v617_v19  ;;  %196 = vmatpush.msra.mxu2 %v617_v19 }
  0x26   :  { %117 = vmatpush.msra.mxu0 %v98_v16  ;;  %218 = vmatpush.msra.mxu3 %v617_v19  ;;  %v321_v16 = vld [vmem:[#allocation8 + $0x8] sm:$0xff] }
  0x27   :  { %175 = vmatpush.msra.mxu1 %v622_v21  ;;  %197 = vmatpush.msra.mxu2 %v622_v21 }
  0x28   :  { %118 = vmatpush.msra.mxu0 %v97_v18  ;;  %219 = vmatpush.msra.mxu3 %v622_v21 }
  0x29   :  { %176 = vmatpush.msra.mxu1 %v627_v23  ;;  %198 = vmatpush.msra.mxu2 %v627_v23 }
  0x2a   :  { %119 = vmatpush.msra.mxu0 %v96_v20  ;;  %220 = vmatpush.msra.mxu3 %v627_v23 }
  0x2b   :  { %177 = vmatpush.msra.mxu1 %v632_v25  ;;  %199 = vmatpush.msra.mxu2 %v632_v25 }
  0x2c   :  { %120 = vmatpush.msra.mxu0 %v95_v22  ;;  %221 = vmatpush.msra.mxu3 %v632_v25  ;;  %v387_v22 = vld [vmem:[%s708_s4] ss:$0 sm:$0xff] }
  0x2d   :  { %178 = vmatpush.msra.mxu1 %v152_v29  ;;  %200 = vmatpush.msra.mxu2 %v152_v29 }
  0x2e   :  { %121 = vmatpush.msra.mxu0 %v94_v24  ;;  %222 = vmatpush.msra.mxu3 %v152_v29 }
  0x2f   :  { %179 = vmatpush.msra.mxu1 %v151_v30  ;;  %201 = vmatpush.msra.mxu2 %v151_v30 }
  0x30   :  { %122 = vmatpush.msra.mxu0 %v93_v26  ;;  %223 = vmatpush.msra.mxu3 %v151_v30 }
  0x31   :  { %180 = vmatpush.msra.mxu1 %v653_v31  ;;  %202 = vmatpush.msra.mxu2 %v653_v31 }
  0x32   :  { %123 = vmatpush.msra.mxu0 %v92_v27  ;;  %224 = vmatpush.msra.mxu3 %v653_v31 }
  0x33   :  { %124 = vmatmul.f32.vlgmr.msra.gmra.mxu0 %v84_v28  ;;  %181 = vmatpush.msra.mxu1 %v149_v33 }
  0x34   :  { %298 = vmatpush.msrb.mxu0 %v581_v4  ;;  %203 = vmatpush.msra.mxu2 %v149_v33 }
  0x35   :  { %225 = vmatpush.msra.mxu3 %v149_v33  ;;  %232 = vmatpush.msrb.mxu1 %v581_v4 }
  0x36   :  { %299 = vmatpush.msrb.mxu0 %v584_v6  ;;  %254 = vmatpush.msrb.mxu2 %v581_v4 }
  0x37   :  { %276 = vmatpush.msrb.mxu3 %v581_v4  ;;  %233 = vmatpush.msrb.mxu1 %v584_v6  ;;  %v329_v4 = vld [vmem:[#allocation8 + $0x48] sm:$0xff] }
  0x38   :  { %300 = vmatpush.msrb.mxu0 %v587_v7  ;;  %255 = vmatpush.msrb.mxu2 %v584_v6 }
  0x39   :  { %277 = vmatpush.msrb.mxu3 %v584_v6  ;;  %234 = vmatpush.msrb.mxu1 %v587_v7 }
  0x3a   :  { %301 = vmatpush.msrb.mxu0 %v592_v9  ;;  %256 = vmatpush.msrb.mxu2 %v587_v7 }
  0x3b   :  { %127 = vmatmul.f32.gmra.mxu0 %v85_v32  ;;  %278 = vmatpush.msrb.mxu3 %v587_v7 }
  0x3c   :  { %302 = vmatpush.msrb.mxu0 %v597_v11  ;;  %235 = vmatpush.msrb.mxu1 %v592_v9 }
  0x3d   :  { %257 = vmatpush.msrb.mxu2 %v592_v9  ;;  %279 = vmatpush.msrb.mxu3 %v592_v9  ;;  %v328_v9 = vld [vmem:[#allocation8 + $0x40] sm:$0xff] }
  0x3e   :  { %303 = vmatpush.msrb.mxu0 %v602_v13  ;;  %236 = vmatpush.msrb.mxu1 %v597_v11 }
  0x3f   :  { %258 = vmatpush.msrb.mxu2 %v597_v11  ;;  %280 = vmatpush.msrb.mxu3 %v597_v11  ;;  %v326_v11 = vld [vmem:[#allocation8 + $0x30] sm:$0xff] }
  0x40   :  { %304 = vmatpush.msrb.mxu0 %v607_v15  ;;  %237 = vmatpush.msrb.mxu1 %v602_v13 }
  0x41   :  { %259 = vmatpush.msrb.mxu2 %v602_v13  ;;  %281 = vmatpush.msrb.mxu3 %v602_v13  ;;  %v324_v13 = vld [vmem:[#allocation8 + $0x20] sm:$0xff] }
  0x42   :  { %305 = vmatpush.msrb.mxu0 %v612_v17  ;;  %238 = vmatpush.msrb.mxu1 %v607_v15 }
  0x43   :  { %260 = vmatpush.msrb.mxu2 %v607_v15  ;;  %282 = vmatpush.msrb.mxu3 %v607_v15  ;;  %v322_v15 = vld [vmem:[#allocation8 + $0x10] sm:$0xff] }
  0x44   :  { %306 = vmatpush.msrb.mxu0 %v617_v19  ;;  %239 = vmatpush.msrb.mxu1 %v612_v17 }
  0x45   :  { %261 = vmatpush.msrb.mxu2 %v612_v17  ;;  %283 = vmatpush.msrb.mxu3 %v612_v17  ;;  %v320_v17 = vld [vmem:[#allocation8] sm:$0xff] }
  0x46   :  { %307 = vmatpush.msrb.mxu0 %v622_v21  ;;  %240 = vmatpush.msrb.mxu1 %v617_v19 }
  0x47   :  { %262 = vmatpush.msrb.mxu2 %v617_v19  ;;  %284 = vmatpush.msrb.mxu3 %v617_v19 }
  0x48   :  { %308 = vmatpush.msrb.mxu0 %v627_v23  ;;  %241 = vmatpush.msrb.mxu1 %v622_v21 }
  0x49   :  { %263 = vmatpush.msrb.mxu2 %v622_v21  ;;  %285 = vmatpush.msrb.mxu3 %v622_v21 }
  0x4a   :  { %309 = vmatpush.msrb.mxu0 %v632_v25  ;;  %242 = vmatpush.msrb.mxu1 %v627_v23 }
  0x4b   :  { %264 = vmatpush.msrb.mxu2 %v627_v23  ;;  %286 = vmatpush.msrb.mxu3 %v627_v23 }
  0x4c   :  { %310 = vmatpush.msrb.mxu0 %v152_v29  ;;  %243 = vmatpush.msrb.mxu1 %v632_v25 }
  0x4d   :  { %265 = vmatpush.msrb.mxu2 %v632_v25  ;;  %287 = vmatpush.msrb.mxu3 %v632_v25 }
  0x4e   :  { %311 = vmatpush.msrb.mxu0 %v151_v30  ;;  %244 = vmatpush.msrb.mxu1 %v152_v29 }
  0x4f   :  { %266 = vmatpush.msrb.mxu2 %v152_v29  ;;  %288 = vmatpush.msrb.mxu3 %v152_v29 }
  0x50   :  { %312 = vmatpush.msrb.mxu0 %v653_v31  ;;  %245 = vmatpush.msrb.mxu1 %v151_v30 }
  0x51   :  { %267 = vmatpush.msrb.mxu2 %v151_v30  ;;  %289 = vmatpush.msrb.mxu3 %v151_v30 }
  0x52   :  { %313 = vmatpush.msrb.mxu0 %v149_v33  ;;  %246 = vmatpush.msrb.mxu1 %v653_v31 }
  0x53   :  { %268 = vmatpush.msrb.mxu2 %v653_v31  ;;  %290 = vmatpush.msrb.mxu3 %v653_v31 }
  0x54   :  { %247 = vmatpush.msrb.mxu1 %v149_v33  ;;  %130 = vmatmul.f32.gmra.mxu0 %v86_v36 }
  0x55   :  { %269 = vmatpush.msrb.mxu2 %v149_v33  ;;  %291 = vmatpush.msrb.mxu3 %v149_v33 }
  0x5c   :  { %133 = vmatmul.f32.gmra.mxu0 %v87_v41 }
  0x64   :  { %136 = vmatmul.f32.gmra.mxu0 %v88_v46 }
  0x6c   :  { %139 = vmatmul.f32.gmra.mxu0 %v89_v51 }
  0x74   :  { %142 = vmatmul.f32.gmra.mxu0 %v90_v56 }
  0x7c   :  { %145 = vmatmul.f32.gmra.mxu0 %v91_v61 }
  0xb0   :  { %v125_v34 = vpop.f32.mrf.mxu0 }
  0xb1   :  { %388 = vtanh.f32 %v125_v34 }
  0xb7   :  { %v389_v35 = vpop.eup %388 }
  0xb8   :  { %182 = vmatmul.f32.vlgmr.msra.gmra.mxu1 %v389_v35  ;;  %v128_v37 = vpop.f32.mrf.mxu0 }
  0xb9   :  { %340 = vmatpush.msra.mxu1 %v335_v62 }
  0xbb   :  { %341 = vmatpush.msra.mxu1 %v334_v63 }
  0xbd   :  { %342 = vmatpush.msra.mxu1 %v333_v0 }
  0xbf   :  { %343 = vmatpush.msra.mxu1 %v332_v1 }
  0xc1   :  { %344 = vmatpush.msra.mxu1 %v331_v2 }
  0xc3   :  { %345 = vmatpush.msra.mxu1 %v330_v3 }
  0xc5   :  { %346 = vmatpush.msra.mxu1 %v329_v4 }
  0xc7   :  { %347 = vmatpush.msra.mxu1 %v328_v9 }
  0xc9   :  { %348 = vmatpush.msra.mxu1 %v327_v10 }
  0xcb   :  { %349 = vmatpush.msra.mxu1 %v326_v11 }
  0xcd   :  { %350 = vmatpush.msra.mxu1 %v325_v12 }
  0xcf   :  { %351 = vmatpush.msra.mxu1 %v324_v13 }
  0xd1   :  { %v131_v42 = vpop.f32.mrf.mxu0  ;;  %352 = vmatpush.msra.mxu1 %v323_v14 }
  0xd3   :  { %353 = vmatpush.msra.mxu1 %v322_v15 }
  0xd5   :  { %354 = vmatpush.msra.mxu1 %v321_v16 }
  0xd7   :  { %355 = vmatpush.msra.mxu1 %v320_v17 }
  0xd9   :  { %v134_v47 = vpop.f32.mrf.mxu0 }
  0xe1   :  { %v137_v52 = vpop.f32.mrf.mxu0 }
  0xe9   :  { %v140_v57 = vpop.f32.mrf.mxu0 }
  0xf1   :  { %v143_v5 = vpop.f32.mrf.mxu0 }
  0xf9   :  { %v146_v18 = vpop.f32.mrf.mxu0 }
 0x135   :  { %v183_v38 = vpop.f32.mrf.mxu1 }
 0x136   :  { %v186_v39 = vadd.f32 %v183_v38, %v128_v37 }
 0x138   :  { %390 = vtanh.f32 %v186_v39 }
 0x13e   :  { %v391_v40 = vpop.eup %390 }
 0x13f   :  { %204 = vmatmul.f32.vlgmr.msra.gmra.mxu2 %v391_v40 }
 0x1c2   :  { %v205_v43 = vpop.f32.mrf.mxu2 }
 0x1c3   :  { %v208_v44 = vadd.f32 %v205_v43, %v131_v42 }
 0x1c5   :  { %392 = vtanh.f32 %v208_v44 }
 0x1cb   :  { %v393_v45 = vpop.eup %392 }
 0x1cc   :  { %226 = vmatmul.f32.vlgmr.msra.gmra.mxu3 %v393_v45 }
 0x24f   :  { %v227_v48 = vpop.f32.mrf.mxu3 }
 0x250   :  { %v230_v49 = vadd.f32 %v227_v48, %v134_v47 }
 0x252   :  { %394 = vtanh.f32 %v230_v49 }
 0x258   :  { %v395_v50 = vpop.eup %394 }
 0x259   :  { %248 = vmatmul.f32.vlgmr.msrb.gmra.mxu1 %v395_v50 }
 0x2d6   :  { %v249_v53 = vpop.f32.mrf.mxu1 }
 0x2d7   :  { %v252_v54 = vadd.f32 %v249_v53, %v137_v52 }
 0x2d9   :  { %396 = vtanh.f32 %v252_v54 }
 0x2df   :  { %v397_v55 = vpop.eup %396 }
 0x2e0   :  { %270 = vmatmul.f32.vlgmr.msrb.gmra.mxu2 %v397_v55 }
 0x363   :  { %v271_v58 = vpop.f32.mrf.mxu2 }
 0x364   :  { %v274_v59 = vadd.f32 %v271_v58, %v140_v57 }
 0x366   :  { %398 = vtanh.f32 %v274_v59 }
 0x36c   :  { %v399_v60 = vpop.eup %398 }
 0x36d   :  { %292 = vmatmul.f32.vlgmr.msrb.gmra.mxu3 %v399_v60 }
 0x3f0   :  { %v293_v6 = vpop.f32.mrf.mxu3 }
 0x3f1   :  { %v296_v7 = vadd.f32 %v293_v6, %v143_v5 }
 0x3f3   :  { %400 = vtanh.f32 %v296_v7 }
 0x3f9   :  { %v401_v8 = vpop.eup %400 }
 0x3fa   :  { %314 = vmatmul.f32.vlgmr.msrb.gmra.mxu0 %v401_v8 }
 0x477   :  { %v315_v19 = vpop.f32.mrf.mxu0 }
 0x478   :  { %v318_v20 = vadd.f32 %v315_v19, %v146_v18 }
 0x47a   :  { %402 = vtanh.f32 %v318_v20 }
 0x480   :  { %v403_v21 = vpop.eup %402 }
 0x481   :  { %356 = vmatmul.f32.vlgmr.msra.gmra.mxu1 %v403_v21 }
 0x4fe   :  { %v357_v23 = vpop.f32.mrf.mxu1 }
 0x4ff   :  { %v358_v24 = vadd.f32 %v387_v22, %v357_v23 }
 0x501   :  { %360 = vst [vmem:[#allocation10] sm:$0xff] %v358_v24 }
 0x502   :  { %371 = dma.vmem_to_hbm [thread:$0]  %s367_s14, 128, %s369_s17, [#allocation4]  }
 0x503   :  { %530 = dma.done.wait [#allocation4], 128  }
 0x504   :  { %531 = vsyncadd [#allocation4], 4294967168 }
 0x505   :  { %376 = vsyncpa [#allocation3], 1 }
 0x506   :  { %377 = vsyncpa [#allocation6], 1 }
 0x507   :  { %378 = vsyncpa [#allocation9], 1 }
 0x508   :  { %379 = vsyncpa [#allocation4], 1 }

</bundles_post_ra>
